<compile_context>
chip_gen: v7x
topology: tpu7x:2x2x1
jax: 0.10.0
libtpu: 0.0.40
codegen_flags: <defaults>
</compile_context>

<pallas_src>
import functools

import jax
import jax.numpy as jnp
from jax.experimental import pallas as pl
from jax.experimental.pallas import tpu as pltpu


def _round_up(x, m):
    return ((x + m - 1) // m) * m


def _ff_kernel(x_ref, w1_ref, b1_ref, w2_ref, b2_ref, o_ref):
    # x_ref : (rt, in_p)
    # w1_ref: (in_p, fc_p)   b1_ref: (1, fc_p)  f32
    # w2_ref: (fc_p, in_p)   b2_ref: (1, in_p)  f32
    x = x_ref[...]
    h = jnp.dot(x, w1_ref[...], preferred_element_type=jnp.float32)
    h = jnp.maximum(h + b1_ref[...], 0.0)                 # bias + ReLU in f32
    h = h.astype(w2_ref.dtype)                            # bf16 feed when weights are bf16
    y = jnp.dot(h, w2_ref[...], preferred_element_type=jnp.float32)
    y = y + b2_ref[...]
    o_ref[...] = y.astype(o_ref.dtype)


@functools.partial(jax.jit, static_argnames=("row_tile",))
def transformer_ff_pallas(x, w1, b1, w2, b2, *, row_tile=256):
    """Forward pass of transformer_ff.

    x : (B, S, in_size)
    w1: (fc_size, in_size), b1: (fc_size,)   -- PyTorch nn.Linear layout
    w2: (in_size, fc_size), b2: (in_size,)
    Returns (B, S, in_size) in x.dtype.
    """
    B, S, in_size = x.shape
    fc_size = w1.shape[0]
    rows = B * S
    dt = x.dtype
    bpe = jnp.dtype(dt).itemsize

    # Lane-dense feature dims and an 8-aligned row tile (clamped for tiny inputs
    # so we don't blow the work up 16x just to fill one huge tile).
    in_p = _round_up(in_size, 128)
    fc_p = _round_up(fc_size, 128)
    rt = min(row_tile, _round_up(rows, 8))
    rows_p = _round_up(rows, rt)

    # Zero padding is semantics-preserving: padded x rows / feature cols are 0,
    # padded W rows/cols are 0, padded biases are 0, so padded outputs are
    # exactly 0 in the extra columns and garbage-free in the kept slice.
    x2d = jnp.pad(x.reshape(rows, in_size),
                  ((0, rows_p - rows), (0, in_p - in_size)))
    w1_t = jnp.pad(w1.T.astype(dt), ((0, in_p - in_size), (0, fc_p - fc_size)))
    w2_t = jnp.pad(w2.T.astype(dt), ((0, fc_p - fc_size), (0, in_p - in_size)))
    b1_p = jnp.pad(b1.astype(jnp.float32), (0, fc_p - fc_size)).reshape(1, fc_p)
    b2_p = jnp.pad(b2.astype(jnp.float32), (0, in_p - in_size)).reshape(1, in_p)

    grid = (rows_p // rt,)

    # VMEM budget: double-buffered x/out tiles, (conservatively double-buffered)
    # resident weights + biases, plus f32 intermediates, with headroom.
    tile_bytes = (
        2 * rt * in_p * bpe                       # x tiles
        + 2 * rt * in_p * bpe                     # out tiles
        + 2 * (in_p * fc_p + fc_p * in_p) * bpe   # weights
        + 2 * (fc_p + in_p) * 4                   # biases (f32)
        + rt * fc_p * 4                           # h intermediate (f32)
        + rt * in_p * 4                           # y intermediate (f32)
    )
    vmem_limit = min(int(tile_bytes * 1.25) + (4 << 20), 100 * 1024 * 1024)

    cost = pl.CostEstimate(
        flops=4 * rows * in_size * fc_size,       # two matmuls
        transcendentals=0,
        bytes_accessed=(2 * rows * in_size * bpe            # x + out
                        + 2 * in_size * fc_size * bpe       # W1 + W2
                        + (in_size + fc_size) * 4),         # biases
    )

    out2d = pl.pallas_call(
        _ff_kernel,
        out_shape=jax.ShapeDtypeStruct((rows_p, in_p), dt),
        grid_spec=pltpu.PrefetchScalarGridSpec(
            num_scalar_prefetch=0,
            grid=grid,
            in_specs=[
                pl.BlockSpec((rt, in_p), lambda i: (i, 0)),     # x rows
                pl.BlockSpec((in_p, fc_p), lambda i: (0, 0)),   # W1^T (resident)
                pl.BlockSpec((1, fc_p), lambda i: (0, 0)),      # b1 (f32)
                pl.BlockSpec((fc_p, in_p), lambda i: (0, 0)),   # W2^T (resident)
                pl.BlockSpec((1, in_p), lambda i: (0, 0)),      # b2 (f32)
            ],
            out_specs=pl.BlockSpec((rt, in_p), lambda i: (i, 0)),
        ),
        compiler_params=pltpu.CompilerParams(
            dimension_semantics=("parallel",),
            vmem_limit_bytes=vmem_limit,
        ),
        cost_estimate=cost,
    )(x2d, w1_t, b1_p, w2_t, b2_p)

    return out2d[:rows, :in_size].reshape(B, S, in_size)


def init_params(key, in_size, fc_size, dtype=jnp.float32):
    """Deterministic init mimicking nn.Linear's U(-1/sqrt(fan_in), 1/sqrt(fan_in))."""
    k1, k2, k3, k4 = jax.random.split(key, 4)
    bound1 = 1.0 / jnp.sqrt(in_size)
    bound2 = 1.0 / jnp.sqrt(fc_size)
    # PyTorch stores weight as (out, in).
    w1 = jax.random.uniform(k1, (fc_size, in_size), dtype, -bound1, bound1)
    b1 = jax.random.uniform(k2, (fc_size,), dtype, -bound1, bound1)
    w2 = jax.random.uniform(k3, (in_size, fc_size), dtype, -bound2, bound2)
    b2 = jax.random.uniform(k4, (in_size,), dtype, -bound2, bound2)
    return w1, b1, w2, b2


def transformer_ff_reference(x, w1, b1, w2, b2):
    h = jnp.maximum(jnp.einsum("bsi,fi->bsf", x, w1) + b1, 0.0)
    return jnp.einsum("bsf,if->bsi", h, w2) + b2


if __name__ == "__main__":
    # Small shapes consistent with the module: batch=2, seq=8, in_size=32, fc=64.
    B, S, IN_SIZE, FC_SIZE = 2, 8, 32, 64

    key = jax.random.PRNGKey(0)
    kx, kp = jax.random.split(key)
    x = jax.random.normal(kx, (B, S, IN_SIZE), jnp.float32)
    w1, b1, w2, b2 = init_params(kp, IN_SIZE, FC_SIZE)

    ref = transformer_ff_reference(x, w1, b1, w2, b2)

    # f32 path: exact semantics vs reference.
    out_f32 = transformer_ff_pallas(x, w1, b1, w2, b2, row_tile=256)
    out_f32 = jax.block_until_ready(out_f32)
    assert out_f32.shape == (B, S, IN_SIZE)
    assert jnp.allclose(out_f32, ref, atol=1e-5, rtol=1e-5), "f32 mismatch vs reference"

    # bf16 path: bf16 activations/weights, f32 accumulation (looser tolerance).
    out_bf16 = transformer_ff_pallas(
        x.astype(jnp.bfloat16), w1, b1, w2, b2, row_tile=256
    )
    out_bf16 = jax.block_until_ready(out_bf16)
    assert out_bf16.shape == (B, S, IN_SIZE)
    assert jnp.allclose(out_bf16.astype(jnp.float32), ref, atol=5e-2, rtol=5e-2), \
        "bf16 mismatch vs reference"

    print("KERNEL_OK")
</pallas_src>

<mosaic_0001>
module attributes {stable_mosaic.version = 11 : i64} {
  func.func @_ff_kernel(%arg0: i32, %arg1: memref<16x128xf32, #tpu.memory_space<vmem>>, %arg2: memref<128x128xf32, #tpu.memory_space<vmem>>, %arg3: memref<1x128xf32, #tpu.memory_space<vmem>>, %arg4: memref<128x128xf32, #tpu.memory_space<vmem>>, %arg5: memref<1x128xf32, #tpu.memory_space<vmem>>, %arg6: memref<16x128xf32, #tpu.memory_space<vmem>>) attributes {dimension_semantics = [#tpu.dimension_semantics<parallel>], iteration_bounds = array<i64: 1>, scalar_prefetch = 0 : i64, scratch_operands = 0 : i64, tpu.core_type = #tpu.core_type<tc>, window_params = [{transform_indices = @transform_0, window_bounds = array<i64: 16, 128>}, {pipeline_mode = #tpu.pipeline_mode<synchronous>, transform_indices = @transform_1, window_bounds = array<i64: 128, 128>}, {pipeline_mode = #tpu.pipeline_mode<synchronous>, transform_indices = @transform_2, window_bounds = array<i64: 1, 128>}, {pipeline_mode = #tpu.pipeline_mode<synchronous>, transform_indices = @transform_3, window_bounds = array<i64: 128, 128>}, {pipeline_mode = #tpu.pipeline_mode<synchronous>, transform_indices = @transform_4, window_bounds = array<i64: 1, 128>}, {transform_indices = @transform_5, window_bounds = array<i64: 16, 128>}]} {
    %c0 = arith.constant 0 : index
    %c0_0 = arith.constant 0 : index
    %0 = vector.load %arg1[%c0, %c0_0] : memref<16x128xf32, #tpu.memory_space<vmem>>, vector<16x128xf32>
    %c0_1 = arith.constant 0 : index
    %c0_2 = arith.constant 0 : index
    %1 = vector.load %arg2[%c0_1, %c0_2] : memref<128x128xf32, #tpu.memory_space<vmem>>, vector<128x128xf32>
    %cst = arith.constant dense<0.000000e+00> : vector<16x128xf32>
    %2 = tpu.matmul %0, %1, %cst {dimension_numbers = #tpu.dot_dimension_numbers<[1], [0], [0], [1], [0, 0, 1, 1], [], []>} : vector<16x128xf32>, vector<128x128xf32>, vector<16x128xf32> -> vector<16x128xf32>
    %c0_3 = arith.constant 0 : index
    %c0_4 = arith.constant 0 : index
    %3 = vector.load %arg3[%c0_3, %c0_4] : memref<1x128xf32, #tpu.memory_space<vmem>>, vector<1x128xf32>
    %4 = vector.broadcast %3 : vector<1x128xf32> to vector<16x128xf32>
    %5 = arith.addf %2, %4 : vector<16x128xf32>
    %cst_5 = arith.constant 0.000000e+00 : f32
    %6 = vector.broadcast %cst_5 : f32 to vector<16x128xf32>
    %7 = arith.maximumf %5, %6 : vector<16x128xf32>
    %c0_6 = arith.constant 0 : index
    %c0_7 = arith.constant 0 : index
    %8 = vector.load %arg4[%c0_6, %c0_7] : memref<128x128xf32, #tpu.memory_space<vmem>>, vector<128x128xf32>
    %cst_8 = arith.constant dense<0.000000e+00> : vector<16x128xf32>
    %9 = tpu.matmul %7, %8, %cst_8 {dimension_numbers = #tpu.dot_dimension_numbers<[1], [0], [0], [1], [0, 0, 1, 1], [], []>} : vector<16x128xf32>, vector<128x128xf32>, vector<16x128xf32> -> vector<16x128xf32>
    %c0_9 = arith.constant 0 : index
    %c0_10 = arith.constant 0 : index
    %10 = vector.load %arg5[%c0_9, %c0_10] : memref<1x128xf32, #tpu.memory_space<vmem>>, vector<1x128xf32>
    %11 = vector.broadcast %10 : vector<1x128xf32> to vector<16x128xf32>
    %12 = arith.addf %9, %11 : vector<16x128xf32>
    %c0_11 = arith.constant 0 : index
    %c0_12 = arith.constant 0 : index
    %13 = vector.load %arg6[%c0_11, %c0_12] : memref<16x128xf32, #tpu.memory_space<vmem>>, vector<16x128xf32>
    tpu.vector_store %arg6[%c0_11, %c0_12], %12 {strides = array<i32>} : memref<16x128xf32, #tpu.memory_space<vmem>>, vector<16x128xf32>,
    return
  }
  func.func @transform_0(%arg0: i32) -> (i32, i32) {
    %c0_i32 = arith.constant 0 : i32
    %c0_i32_0 = arith.constant 0 : i32
    return %arg0, %c0_i32 : i32, i32
  }
  func.func @transform_1(%arg0: i32) -> (i32, i32) {
    %c0_i32 = arith.constant 0 : i32
    %c0_i32_0 = arith.constant 0 : i32
    %c0_i32_1 = arith.constant 0 : i32
    return %c0_i32, %c0_i32_0 : i32, i32
  }
  func.func @transform_2(%arg0: i32) -> (i32, i32) {
    %c0_i32 = arith.constant 0 : i32
    %c0_i32_0 = arith.constant 0 : i32
    %c0_i32_1 = arith.constant 0 : i32
    return %c0_i32, %c0_i32_0 : i32, i32
  }
  func.func @transform_3(%arg0: i32) -> (i32, i32) {
    %c0_i32 = arith.constant 0 : i32
    %c0_i32_0 = arith.constant 0 : i32
    %c0_i32_1 = arith.constant 0 : i32
    return %c0_i32, %c0_i32_0 : i32, i32
  }
  func.func @transform_4(%arg0: i32) -> (i32, i32) {
    %c0_i32 = arith.constant 0 : i32
    %c0_i32_0 = arith.constant 0 : i32
    %c0_i32_1 = arith.constant 0 : i32
    return %c0_i32, %c0_i32_0 : i32, i32
  }
  func.func @transform_5(%arg0: i32) -> (i32, i32) {
    %c0_i32 = arith.constant 0 : i32
    %c0_i32_0 = arith.constant 0 : i32
    return %arg0, %c0_i32 : i32, i32
  }
}

</mosaic_0001>

<bundles_post_ra>
// kernel: transformer_ff_pallas.1
= control target key start
LH: loop header
LB: loop body
LE: loop exit
PB: predicated region body
PF: predicated region fallthrough
CT: control target
= control target key end

     0   :  { %s542_s1 = inlined_call_operand.vmem [shape: f32[128,128], index: 1, kind: input, shape index: {}]   ;;  %s543_s0 = inlined_call_operand.vmem [shape: f32[16,128], index: 0, kind: input, shape index: {}]   ;;  %s544_s3 = inlined_call_operand.vmem [shape: f32[128,128], index: 3, kind: input, shape index: {}]   ;;  %s545_s2 = inlined_call_operand.vmem [shape: f32[1,128], index: 2, kind: input, shape index: {}]   ;;  %s546_s4 = inlined_call_operand.vmem [shape: f32[1,128], index: 4, kind: input, shape index: {}]   ;;  %s547_s5 = inlined_call_operand.vmem [shape: f32[16,128], index: 5, kind: output, shape index: {}]  }
   0x1   :  { %v22_v0 = vld [vmem:[%s542_s1] sm:$0xff]  ;;  %v23_v1 = vld [vmem:[%s542_s1 + $0x8] sm:$0xff]  ;;  %v24_v2 = vld [vmem:[%s542_s1 + $0x10] sm:$0xff] }
   0x2   :  { %v334_v3 = vpack.c.bf16 %v23_v1, %v22_v0  ;;  %v25_v4 = vld [vmem:[%s542_s1 + $0x18] sm:$0xff]  ;;  %v26_v6 = vld [vmem:[%s542_s1 + $0x20] sm:$0xff]  ;;  %v27_v7 = vld [vmem:[%s542_s1 + $0x28] sm:$0xff] }
   0x3   :  { %v338_v5 = vpack.c.bf16 %v25_v4, %v24_v2  ;;  %v342_v8 = vpack.c.bf16 %v27_v7, %v26_v6  ;;  %v28_v9 = vld [vmem:[%s542_s1 + $0x30] sm:$0xff]  ;;  %v29_v10 = vld [vmem:[%s542_s1 + $0x38] sm:$0xff]  ;;  %v20_v11 = vld [vmem:[%s543_s0] sm:$0xff] }
   0x4   :  { %335 = vmatprep.subr.bf16.mxu0 %v334_v3  ;;  %296 = vmatprep.mubr.f32.mxu0 %v20_v11  ;;  %v122_v12 = vld [vmem:[%s544_s3] sm:$0xff]  ;;  %v123_v13 = vld [vmem:[%s544_s3 + $0x8] sm:$0xff]  ;;  %v124_v14 = vld [vmem:[%s544_s3 + $0x10] sm:$0xff]  ;;  %v346_v20 = vpack.c.bf16 %v29_v10, %v28_v9 }
   0x5   :  { %337 = vmatpush3.bf16.msra.mxu0 %v334_v3  ;;  %v366_v15 = vpack.c.bf16 %v123_v13, %v122_v12  ;;  %v125_v16 = vld [vmem:[%s544_s3 + $0x18] sm:$0xff]  ;;  %v126_v18 = vld [vmem:[%s544_s3 + $0x20] sm:$0xff]  ;;  %v127_v19 = vld [vmem:[%s544_s3 + $0x28] sm:$0xff] }
   0x6   :  { %339 = vmatprep.subr.bf16.mxu0 %v338_v5  ;;  %v370_v17 = vpack.c.bf16 %v125_v16, %v124_v14  ;;  %v30_v21 = vld [vmem:[%s542_s1 + $0x40] sm:$0xff]  ;;  %v31_v22 = vld [vmem:[%s542_s1 + $0x48] sm:$0xff]  ;;  %v374_v23 = vpack.c.bf16 %v127_v19, %v126_v18  ;;  %v128_v24 = vld [vmem:[%s544_s3 + $0x30] sm:$0xff] }
   0x7   :  { %367 = vmatprep.subr.bf16.mxu1 %v366_v15  ;;  %v129_v25 = vld [vmem:[%s544_s3 + $0x38] sm:$0xff]  ;;  %v350_v26 = vpack.c.bf16 %v31_v22, %v30_v21  ;;  %v32_v27 = vld [vmem:[%s542_s1 + $0x50] sm:$0xff]  ;;  %v130_v30 = vld [vmem:[%s544_s3 + $0x40] sm:$0xff] }
   0x8   :  { %369 = vmatpush3.bf16.msra.mxu1 %v366_v15  ;;  %v33_v28 = vld [vmem:[%s542_s1 + $0x58] sm:$0xff]  ;;  %v378_v29 = vpack.c.bf16 %v129_v25, %v128_v24  ;;  %v131_v31 = vld [vmem:[%s544_s3 + $0x48] sm:$0xff]  ;;  %v34_v33 = vld [vmem:[%s542_s1 + $0x60] sm:$0xff] }
   0x9   :  { %341 = vmatpush3.bf16.msra.mxu0 %v338_v5  ;;  %371 = vmatprep.subr.bf16.mxu1 %v370_v17  ;;  %v354_v32 = vpack.c.bf16 %v33_v28, %v32_v27  ;;  %v35_v34 = vld [vmem:[%s542_s1 + $0x68] sm:$0xff]  ;;  %v382_v35 = vpack.c.bf16 %v131_v31, %v130_v30  ;;  %v132_v36 = vld [vmem:[%s544_s3 + $0x50] sm:$0xff]  ;;  %v133_v37 = vld [vmem:[%s544_s3 + $0x58] sm:$0xff] }
   0xa   :  { %343 = vmatprep.subr.bf16.mxu0 %v342_v8  ;;  %v358_v38 = vpack.c.bf16 %v35_v34, %v34_v33  ;;  %v36_v39 = vld [vmem:[%s542_s1 + $0x70] sm:$0xff]  ;;  %v37_v40 = vld [vmem:[%s542_s1 + $0x78] sm:$0xff]  ;;  %v386_v41 = vpack.c.bf16 %v133_v37, %v132_v36  ;;  %v134_v42 = vld [vmem:[%s544_s3 + $0x60] sm:$0xff] }
   0xb   :  { %v135_v43 = vld [vmem:[%s544_s3 + $0x68] sm:$0xff]  ;;  %v362_v44 = vpack.c.bf16 %v37_v40, %v36_v39  ;;  %v136_v47 = vld [vmem:[%s544_s3 + $0x70] sm:$0xff]  ;;  %v137_v48 = vld [vmem:[%s544_s3 + $0x78] sm:$0xff] }
   0xc   :  { %373 = vmatpush3.bf16.msra.mxu1 %v370_v17  ;;  %v390_v45 = vpack.c.bf16 %v135_v43, %v134_v42  ;;  %v21_v46 = vld [vmem:[%s543_s0 + $0x8] sm:$0xff]  ;;  %v394_v49 = vpack.c.bf16 %v137_v48, %v136_v47  ;;  %v226_v50 = vld [vmem:[%s545_s2] ss:$0 sm:$0xff] }
   0xd   :  { %345 = vmatpush3.bf16.msra.mxu0 %v342_v8  ;;  %375 = vmatprep.subr.bf16.mxu1 %v374_v23  ;;  %v227_v57 = vld [vmem:[%s546_s4] ss:$0 sm:$0xff] }
   0xe   :  { %347 = vmatprep.subr.bf16.mxu0 %v346_v20 }
  0x10   :  { %377 = vmatpush3.bf16.msra.mxu1 %v374_v23 }
  0x11   :  { %349 = vmatpush3.bf16.msra.mxu0 %v346_v20  ;;  %379 = vmatprep.subr.bf16.mxu1 %v378_v29 }
  0x12   :  { %351 = vmatprep.subr.bf16.mxu0 %v350_v26 }
  0x14   :  { %381 = vmatpush3.bf16.msra.mxu1 %v378_v29 }
  0x15   :  { %353 = vmatpush3.bf16.msra.mxu0 %v350_v26  ;;  %383 = vmatprep.subr.bf16.mxu1 %v382_v35 }
  0x16   :  { %355 = vmatprep.subr.bf16.mxu0 %v354_v32 }
  0x18   :  { %385 = vmatpush3.bf16.msra.mxu1 %v382_v35 }
  0x19   :  { %357 = vmatpush3.bf16.msra.mxu0 %v354_v32  ;;  %387 = vmatprep.subr.bf16.mxu1 %v386_v41 }
  0x1a   :  { %359 = vmatprep.subr.bf16.mxu0 %v358_v38 }
  0x1c   :  { %389 = vmatpush3.bf16.msra.mxu1 %v386_v41 }
  0x1d   :  { %361 = vmatpush3.bf16.msra.mxu0 %v358_v38  ;;  %391 = vmatprep.subr.bf16.mxu1 %v390_v45 }
  0x1e   :  { %363 = vmatprep.subr.bf16.mxu0 %v362_v44 }
  0x20   :  { %393 = vmatpush3.bf16.msra.mxu1 %v390_v45 }
  0x21   :  { %365 = vmatpush3.bf16.msra.mxu0 %v362_v44  ;;  %395 = vmatprep.subr.bf16.mxu1 %v394_v49 }
  0x24   :  { %297 = vmatmul.mubr.f32.vlgmr.msra.gmra.mrb[0].mxu0 %v21_v46  ;;  %397 = vmatpush3.bf16.msra.mxu1 %v394_v49 }
  0xf7   :  { %v298_v51 = vpop.f32.mrb[0].mxu0 }
  0xf8   :  { %v117_v52 = vadd.f32 %v298_v51, %v226_v50  ;;  %v111_v53 = vpop.f32.mrb[1].mxu0 }
  0xf9   :  { %v112_v54 = vadd.f32 %v226_v50, %v111_v53 }
  0xfa   :  { %v121_v56 = vmax.f32 %v117_v52, 0.0 }
  0xfb   :  { %v120_v55 = vmax.f32 %v112_v54, 0.0 }
  0xfd   :  { %331 = vmatprep.mubr.f32.mxu1 %v120_v55 }
  0xfe   :  { %332 = vmatmul.mubr.f32.vlgmr.msra.gmra.mrb[0].mxu1 %v121_v56 }
 0x1d1   :  { %v333_v58 = vpop.f32.mrb[0].mxu1 }
 0x1d2   :  { %v217_v59 = vadd.f32 %v333_v58, %v227_v57  ;;  %v211_v60 = vpop.f32.mrb[1].mxu1 }
 0x1d3   :  { %v212_v61 = vadd.f32 %v227_v57, %v211_v60 }
 0x1d4   :  { %221 = vst [vmem:[%s547_s5 + $0x8] sm:$0xff] %v217_v59 }
 0x1d5   :  { %220 = vst [vmem:[%s547_s5] sm:$0xff] %v212_v61 }

</bundles_post_ra>
